<compile_context>
chip_gen: v5e
topology: v5e:2x2
jax: 0.10.0
libtpu: 0.0.40
codegen_flags: <defaults>
</compile_context>

<pallas_src>
import jax
import jax.numpy as jnp
from jax.experimental import pallas as pl
from jax.experimental.pallas import tpu as pltpu

_LANE = 128
_MAX_OUT_BLOCK_BYTES = 8 * 1024 * 1024   # per-step output slab (>= roofline knee)
_MIN_PALLAS_BYTES = 1 << 20              # below this, plain jnp.broadcast_to wins


def _pos_embed_kernel(emb_ref, out_ref):
    # emb_ref: (1, tile_f)          lane-dense slice of the flattened table prefix
    # out_ref: (batch_tile, tile_f) same slice replicated across the batch rows
    # Sublane broadcast of a single row; hidden under the HBM write-out.
    out_ref[...] = jnp.broadcast_to(emb_ref[...], out_ref.shape)


def _select_tiles(batch, flat_len, itemsize, sublane, max_out_block_bytes):
    """Pick (batch_tile, tile_f) so batch_tile*tile_f*itemsize <= budget.

    batch_tile is chosen first (full batch, or a multiple of `sublane` rounded
    DOWN); tile_f is derived from the remaining budget (full flat axis, or a
    multiple of 128 lanes).  Never exceeds the budget.
    """
    row_bytes = flat_len * itemsize
    # Smallest legal batch_tile: full batch (always legal) or one sublane group.
    min_bt = batch if batch <= sublane else sublane

    if min_bt * row_bytes <= max_out_block_bytes:
        # Case A: one flat tile covers the whole seq*d_model axis (no ragged
        # lane tiles, no 128 constraint since block last dim == array dim).
        tile_f = flat_len
        max_rows = max_out_block_bytes // row_bytes
        if max_rows >= batch:
            batch_tile = batch
        else:
            # batch > sublane here; round DOWN to a sublane multiple.
            batch_tile = min(batch, max(sublane, (max_rows // sublane) * sublane))
    else:
        # Case B: flat axis must be tiled.  Fix batch_tile at its minimum,
        # then give the rest of the budget to the lane dimension.
        batch_tile = min_bt
        tile_f = (max_out_block_bytes // (batch_tile * itemsize)) // _LANE * _LANE
        tile_f = max(_LANE, tile_f)
    return batch_tile, tile_f


def learnable_absolute_position(
    x,
    pos_embedding,
    *,
    max_out_block_bytes=_MAX_OUT_BLOCK_BYTES,   # 8 MiB; may bump to 16 MiB on v6e
    min_pallas_bytes=_MIN_PALLAS_BYTES,
):
    """Pallas equivalent of LearnableAbsolutePosition.forward.

    Args:
      x: (batch, seq_len, ...) — only its leading two dims are used.
      pos_embedding: (max_len, d_model) embedding table (nn.Embedding weight).

    Returns:
      (batch, seq_len, d_model) positional encodings (table dtype).
    """
    batch, seq_len = x.shape[:2]
    max_len, d_model = pos_embedding.shape
    assert seq_len <= max_len, "seq_len exceeds max_len of the position table"

    dtype = pos_embedding.dtype
    itemsize = jnp.dtype(dtype).itemsize
    flat_len = seq_len * d_model
    out_bytes = batch * flat_len * itemsize

    # Small-shape bypass: kernel launch + per-step overhead would dominate.
    if out_bytes < min_pallas_bytes:
        return jnp.broadcast_to(pos_embedding[:seq_len][None],
                                (batch, seq_len, d_model))

    sublane = max(8, 32 // itemsize)          # 8 for f32, 16 for bf16, ...

    # Lane-dense flat view of the needed table prefix (row-major => cheap).
    table_flat = pos_embedding[:seq_len].reshape(1, flat_len)

    batch_tile, tile_f = _select_tiles(batch, flat_len, itemsize, sublane,
                                       max_out_block_bytes)
    n_f = pl.cdiv(flat_len, tile_f)
    n_b = pl.cdiv(batch, batch_tile)

    out_block_bytes = batch_tile * tile_f * itemsize
    in_block_bytes = tile_f * itemsize
    # Double-buffered input + output blocks + margin; worst case ~40 MiB,
    # comfortably under v7x's 64 MiB physical VMEM.
    vmem_limit = max(2 * (out_block_bytes + in_block_bytes) + (8 << 20), 16 << 20)

    cost = pl.CostEstimate(
        flops=0,
        transcendentals=0,
        # Table prefix read (~once) + full output write.
        bytes_accessed=flat_len * itemsize + out_bytes,
    )

    grid_spec = pltpu.PrefetchScalarGridSpec(
        num_scalar_prefetch=0,
        # Batch innermost: input block index (0, f) is constant across it, so
        # the table prefix is DMA'd from HBM once per flat tile (read-once).
        grid=(n_f, n_b),
        in_specs=[pl.BlockSpec((1, tile_f), lambda f, b: (0, f))],
        out_specs=pl.BlockSpec((batch_tile, tile_f), lambda f, b: (b, f)),
    )

    out_flat = pl.pallas_call(
        _pos_embed_kernel,
        out_shape=jax.ShapeDtypeStruct((batch, flat_len), dtype),
        grid_spec=grid_spec,
        compiler_params=pltpu.CompilerParams(
            dimension_semantics=("parallel", "parallel"),
            vmem_limit_bytes=vmem_limit,
        ),
        cost_estimate=cost,
    )(table_flat)

    return out_flat.reshape(batch, seq_len, d_model)


if __name__ == "__main__":
    d_model = 32
    max_len = 64

    key = jax.random.PRNGKey(0)
    k_emb, k_x = jax.random.split(key)

    # Deterministic "learned" embedding table (nn.Embedding weight).
    pos_embedding = jax.random.normal(k_emb, (max_len, d_model), dtype=jnp.float32)

    def ref(b, s):
        return jnp.broadcast_to(pos_embedding[:s][None], (b, s, d_model))

    # 1) Pallas path, single-tile case (flat_len multiple of 128).
    batch, seq_len = 2, 8
    x = jax.random.normal(k_x, (batch, seq_len, d_model), dtype=jnp.float32)
    out = jax.block_until_ready(
        learnable_absolute_position(x, pos_embedding, min_pallas_bytes=0))
    assert out.shape == (batch, seq_len, d_model)
    assert jnp.array_equal(out, ref(batch, seq_len))

    # 2) Pallas path, ragged flat length (10*32 = 320, not a multiple of 128):
    #    full-dim last block, no padding / post-slice needed.
    x2 = jnp.zeros((batch, 10, d_model), dtype=jnp.float32)
    out2 = jax.block_until_ready(
        learnable_absolute_position(x2, pos_embedding, min_pallas_bytes=0))
    assert out2.shape == (batch, 10, d_model)
    assert jnp.array_equal(out2, ref(batch, 10))

    # 3) Pallas path with tiled flat axis AND tiled (ragged) batch axis,
    #    exercised at small shapes via a tiny slab budget.
    batch3, seq3 = 17, 41                       # flat_len = 1312 -> ragged 128-tiles
    x3 = jnp.zeros((batch3, seq3, d_model), dtype=jnp.float32)
    out3 = jax.block_until_ready(
        learnable_absolute_position(
            x3, pos_embedding, max_out_block_bytes=4096, min_pallas_bytes=0))
    assert out3.shape == (batch3, seq3, d_model)
    assert jnp.array_equal(out3, ref(batch3, seq3))

    # 4) Small-shape bypass path (default threshold).
    out4 = jax.block_until_ready(learnable_absolute_position(x, pos_embedding))
    assert jnp.array_equal(out4, ref(batch, seq_len))

    print("KERNEL_OK")
</pallas_src>

<mosaic_0001>
module attributes {stable_mosaic.version = 11 : i64} {
  func.func @_pos_embed_kernel(%arg0: i32, %arg1: i32, %arg2: memref<1x256xf32, #tpu.memory_space<vmem>>, %arg3: memref<2x256xf32, #tpu.memory_space<vmem>>) attributes {dimension_semantics = [#tpu.dimension_semantics<parallel>, #tpu.dimension_semantics<parallel>], iteration_bounds = array<i64: 1, 1>, scalar_prefetch = 0 : i64, scratch_operands = 0 : i64, tpu.core_type = #tpu.core_type<tc>, window_params = [{transform_indices = @transform_0, window_bounds = array<i64: 1, 256>}, {transform_indices = @transform_1, window_bounds = array<i64: 2, 256>}]} {
    %c0 = arith.constant 0 : index
    %c0_0 = arith.constant 0 : index
    %0 = vector.load %arg2[%c0, %c0_0] : memref<1x256xf32, #tpu.memory_space<vmem>>, vector<1x256xf32>
    %1 = vector.shape_cast %0 : vector<1x256xf32> to vector<1x256xf32>
    %2 = vector.broadcast %1 : vector<1x256xf32> to vector<2x256xf32>
    %c0_1 = arith.constant 0 : index
    %c0_2 = arith.constant 0 : index
    %3 = vector.load %arg3[%c0_1, %c0_2] : memref<2x256xf32, #tpu.memory_space<vmem>>, vector<2x256xf32>
    tpu.vector_store %arg3[%c0_1, %c0_2], %2 {strides = array<i32>} : memref<2x256xf32, #tpu.memory_space<vmem>>, vector<2x256xf32>,
    return
  }
  func.func @transform_0(%arg0: i32, %arg1: i32) -> (i32, i32) {
    %c0_i32 = arith.constant 0 : i32
    %c0_i32_0 = arith.constant 0 : i32
    return %c0_i32, %arg0 : i32, i32
  }
  func.func @transform_1(%arg0: i32, %arg1: i32) -> (i32, i32) {
    %c0_i32 = arith.constant 0 : i32
    return %arg1, %arg0 : i32, i32
  }
}

</mosaic_0001>

<bundles_post_ra>
// kernel: tpu_custom_call.1
= control target key start
LH: loop header
LB: loop body
LE: loop exit
PB: predicated region body
PF: predicated region fallthrough
CT: control target
= control target key end

     0   :  { %6 = vsyncpa [#allocation3], 0  ;;  %s121_s0 = inlined_call_operand.hbm [shape: f32[1,256], index: 0, kind: input, shape index: {}]   ;;  %s122_s1 = inlined_call_operand.hbm [shape: f32[2,256], index: 1, kind: output, shape index: {}]  }
   0x1   :  { %7 = vsyncpa [#allocation4], 0  ;;  %s13_s8 = sshll.u32 %s121_s0, 4  ;;  %s103_s9 = smov [#allocation2]   ;;  %s14_s8 = int_to_ptr.hbm [resolvable:$true] %s13_s8 }
   0x2   :  { %s15_s10 = sshll.u32 %s103_s9, 4  ;;  %s16_s10 = int_to_ptr.vmem [resolvable:$true] %s15_s10 }
   0x3   :  { %18 = dma.hbm_to_vmem [thread:$0]  %s14_s8, 32, %s16_s10, [#allocation3]  }
   0x4   :  { %99 = dma.done.wait [#allocation3], 32  }
   0x5   :  { %100 = vsyncadd [#allocation3], 4294967264  ;;  %v23_v0 = vld [vmem:[#allocation2] sm:$0x3]  ;;  %s104_s11 = smov [#allocation5]   ;;  %s39_s15 = sshll.u32 %s122_s1, 4  ;;  %s40_s15 = int_to_ptr.hbm [resolvable:$true] %s39_s15 }
   0x6   :  { %v25_v1 = vperm.slane %v23_v0, 0  ;;  %v26_v2 = vperm.slane %v23_v0, 1  ;;  %s37_s12 = sshll.u32 %s104_s11, 4  ;;  %vm28_vm0 = vcmask 1041408   ;;  %s38_s12 = int_to_ptr.vmem [resolvable:$true] %s37_s12 }
   0x8   :  { %v27_v3 = vrot.slane %v26_v2, 6 }
   0xa   :  { %v29_v4 = vsel %vm28_vm0, %v25_v1, %v27_v3 }
   0xb   :  { %31 = vst [vmem:[#allocation5] sm:$0xf] %v29_v4 }
   0xc   :  { %42 = dma.vmem_to_hbm [thread:$0]  %s38_s12, 64, %s40_s15, [#allocation4]  }
   0xd   :  { %101 = dma.done.wait [#allocation4], 64  }
   0xe   :  { %102 = vsyncadd [#allocation4], 4294967232 }
   0xf   :  { %47 = vsyncpa [#allocation3], 1 }
  0x10   :  { %48 = vsyncpa [#allocation4], 1 }

</bundles_post_ra>
